<compile_context>
chip_gen: v7x
topology: tpu7x:2x2x1
jax: 0.10.0
libtpu: 0.0.40
codegen_flags: <defaults>
</compile_context>

<pallas_src>
import functools

import jax
import jax.numpy as jnp
from jax.experimental import pallas as pl
from jax.experimental.pallas import tpu as pltpu


LANES = 128
SUBLANES = 8
MAX_BLOCK_ROWS = 2048  # (2048, 128) f32 = 1 MiB per buffer


def _ceil_to(x, m):
    return ((x + m - 1) // m) * m


def _padded_rows(n):
    """Rows of the (rows, 128) state slab: ceil(n/128), rounded up to 8."""
    rows_needed = _ceil_to(max(n, 1), LANES) // LANES
    return _ceil_to(rows_needed, SUBLANES)


def _lif_kernel(cur_ref, mem_ref, thr_ref,
                spk_ref, mem_out_ref, pre_ref, thr_out_ref,
                *, beta, threshold_scale, threshold_decay):
    # 1. Update membrane potential
    mem = jnp.float32(beta) * mem_ref[...] + cur_ref[...]
    pre_ref[...] = mem
    thr = thr_ref[...]
    # 2. Spike if membrane potential exceeds threshold
    fired = mem > thr
    spk_ref[...] = fired.astype(jnp.float32)
    # 3. Reset the membrane potential if spiked (select instead of mul+sub)
    mem_out_ref[...] = jnp.where(fired, mem - thr, mem)
    # Adaptive threshold update: thr * (scale if fired else decay)
    thr_out_ref[...] = thr * jnp.where(fired,
                                       jnp.float32(threshold_scale),
                                       jnp.float32(threshold_decay))


def _lif_step_2d(cur2d, mem2d, thr2d, *, beta, threshold_scale,
                 threshold_decay):
    rows, cols = cur2d.shape
    assert cols == LANES
    block_rows = min(MAX_BLOCK_ROWS, rows)
    grid = (pl.cdiv(rows, block_rows),)
    spec = pl.BlockSpec((block_rows, LANES), lambda i: (i, 0))
    kernel = functools.partial(
        _lif_kernel, beta=beta, threshold_scale=threshold_scale,
        threshold_decay=threshold_decay)
    out_shape = jax.ShapeDtypeStruct((rows, cols), jnp.float32)
    return pl.pallas_call(
        kernel,
        out_shape=(out_shape, out_shape, out_shape, out_shape),
        grid_spec=pltpu.PrefetchScalarGridSpec(
            num_scalar_prefetch=0,
            grid=grid,
            in_specs=[spec, spec, spec],
            out_specs=(spec, spec, spec, spec),
        ),
        # mem-in -> mem-out, thr-in -> thr-out: state overwritten in place.
        input_output_aliases={1: 1, 2: 3},
        compiler_params=pltpu.CompilerParams(
            dimension_semantics=("parallel",),
            vmem_limit_bytes=32 << 20),
    )(cur2d, mem2d, thr2d)


def _lif_step(current, mem2d, thr2d, *, beta, threshold_scale,
              threshold_decay):
    """Full step (layout plumbing + kernel) as a single jittable function."""
    shape = current.shape
    n = current.size
    rows, lanes = mem2d.shape

    flat = current.astype(jnp.float32).reshape(-1)
    pad = rows * lanes - n
    if pad:
        flat = jnp.pad(flat, (0, pad))
    cur2d = flat.reshape(rows, lanes)

    spk2d, mem2d, pre2d, thr2d = _lif_step_2d(
        cur2d, mem2d, thr2d, beta=beta, threshold_scale=threshold_scale,
        threshold_decay=threshold_decay)

    if pad:
        spk = spk2d.reshape(-1)[:n].reshape(shape)
    else:
        spk = spk2d.reshape(shape)
    return spk, mem2d, pre2d, thr2d


class LIF:
    """JAX/Pallas port of the PyTorch LIF module (stateful, per-call step).

    Recurrent state is kept in the padded 2-D (rows, 128) layout between
    calls; `mem`, `prereset_mem`, `adaptive_threshold` properties give the
    original-shaped views for inspection.
    """

    def __init__(self, beta, threshold_scale, threshold_decay, threshold=1.0):
        assert 0.0 <= beta <= 1.0, "beta must be in the range [0, 1]"
        assert threshold_scale >= 1.0, "threshold_scale must be >= 1"
        assert 0.0 <= threshold_decay <= 1.0, "threshold_decay must be in [0, 1]"
        self.beta = float(beta)
        self.threshold = float(threshold)
        self.threshold_scale = float(threshold_scale)
        self.threshold_decay = float(threshold_decay)

        self._shape = None
        self._n = None
        self._rows = None
        self._mem2d = None
        self._pre2d = None
        self._thr2d = None

        # Jitted step; donate the recurrent state (mem, thr) so XLA reuses
        # their HBM buffers (pairs with input_output_aliases in the kernel).
        self._step = jax.jit(
            functools.partial(_lif_step, beta=self.beta,
                              threshold_scale=self.threshold_scale,
                              threshold_decay=self.threshold_decay),
            donate_argnums=(1, 2))

    # --- original-shaped state views --------------------------------------
    def _from2d(self, x2d):
        return x2d.reshape(-1)[: self._n].reshape(self._shape)

    @property
    def mem(self):
        return None if self._mem2d is None else self._from2d(self._mem2d)

    @property
    def prereset_mem(self):
        return None if self._pre2d is None else self._from2d(self._pre2d)

    @property
    def adaptive_threshold(self):
        return None if self._thr2d is None else self._from2d(self._thr2d)

    # --- forward ------------------------------------------------------------
    def __call__(self, current):
        current = jnp.asarray(current, jnp.float32)
        if self._mem2d is None:
            self._shape = current.shape
            self._n = current.size
            self._rows = _padded_rows(self._n)
            self._mem2d = jnp.zeros((self._rows, LANES), jnp.float32)
            self._pre2d = jnp.zeros((self._rows, LANES), jnp.float32)
            self._thr2d = jnp.full((self._rows, LANES), self.threshold,
                                   jnp.float32)

        spk, self._mem2d, self._pre2d, self._thr2d = self._step(
            current, self._mem2d, self._thr2d)
        return spk


def _reference_step(current, mem, thr, beta, tscale, tdecay):
    mem = beta * mem + current
    pre = mem
    spk = jnp.where(mem > thr, 1.0, 0.0)
    mem = mem - spk * thr
    thr = jnp.where(spk > 0, thr * tscale, thr * tdecay)
    return spk, mem, pre, thr


if __name__ == "__main__":
    key = jax.random.PRNGKey(0)
    N, C, H, W = 2, 4, 16, 16  # NCHW, matches the module's elementwise use
    T = 3  # a few timesteps to exercise the stateful recurrence

    lif = LIF(beta=0.9, threshold_scale=1.5, threshold_decay=0.95,
              threshold=1.0)

    # pure-JAX reference state
    ref_mem = jnp.zeros((N, C, H, W), jnp.float32)
    ref_thr = jnp.full((N, C, H, W), 1.0, jnp.float32)

    ok = True
    for t in range(T):
        key, sub = jax.random.split(key)
        current = 2.0 * jax.random.uniform(sub, (N, C, H, W),
                                           dtype=jnp.float32)
        spk = lif(current)
        spk = jax.block_until_ready(spk)

        ref_spk, ref_mem, ref_pre, ref_thr = _reference_step(
            current, ref_mem, ref_thr, lif.beta, lif.threshold_scale,
            lif.threshold_decay)

        ok &= bool(jnp.allclose(spk, ref_spk))
        ok &= bool(jnp.allclose(lif.mem, ref_mem, atol=1e-6))
        ok &= bool(jnp.allclose(lif.prereset_mem, ref_pre, atol=1e-6))
        ok &= bool(jnp.allclose(lif.adaptive_threshold, ref_thr, atol=1e-6))

    assert ok, "Pallas LIF output mismatch vs reference"
    print("KERNEL_OK")
</pallas_src>

<mosaic_0001>
module attributes {stable_mosaic.version = 11 : i64} {
  func.func @_lif_kernel(%arg0: i32, %arg1: memref<16x128xf32, #tpu.memory_space<vmem>>, %arg2: memref<16x128xf32, #tpu.memory_space<vmem>>, %arg3: memref<16x128xf32, #tpu.memory_space<vmem>>, %arg4: memref<16x128xf32, #tpu.memory_space<vmem>>, %arg5: memref<16x128xf32, #tpu.memory_space<vmem>>, %arg6: memref<16x128xf32, #tpu.memory_space<vmem>>, %arg7: memref<16x128xf32, #tpu.memory_space<vmem>>) attributes {dimension_semantics = [#tpu.dimension_semantics<parallel>], iteration_bounds = array<i64: 1>, scalar_prefetch = 0 : i64, scratch_operands = 0 : i64, tpu.core_type = #tpu.core_type<tc>, window_params = [{transform_indices = @transform_0, window_bounds = array<i64: 16, 128>}, {transform_indices = @transform_1, window_bounds = array<i64: 16, 128>}, {transform_indices = @transform_2, window_bounds = array<i64: 16, 128>}, {transform_indices = @transform_3, window_bounds = array<i64: 16, 128>}, {transform_indices = @transform_4, window_bounds = array<i64: 16, 128>}, {transform_indices = @transform_5, window_bounds = array<i64: 16, 128>}, {transform_indices = @transform_6, window_bounds = array<i64: 16, 128>}]} {
    %c0 = arith.constant 0 : index
    %c0_0 = arith.constant 0 : index
    %0 = vector.load %arg2[%c0, %c0_0] : memref<16x128xf32, #tpu.memory_space<vmem>>, vector<16x128xf32>
    %cst = arith.constant 0.899999976 : f32
    %1 = vector.broadcast %cst : f32 to vector<16x128xf32>
    %2 = arith.mulf %1, %0 : vector<16x128xf32>
    %c0_1 = arith.constant 0 : index
    %c0_2 = arith.constant 0 : index
    %3 = vector.load %arg1[%c0_1, %c0_2] : memref<16x128xf32, #tpu.memory_space<vmem>>, vector<16x128xf32>
    %4 = arith.addf %2, %3 : vector<16x128xf32>
    %c0_3 = arith.constant 0 : index
    %c0_4 = arith.constant 0 : index
    %5 = vector.load %arg6[%c0_3, %c0_4] : memref<16x128xf32, #tpu.memory_space<vmem>>, vector<16x128xf32>
    tpu.vector_store %arg6[%c0_3, %c0_4], %4 {strides = array<i32>} : memref<16x128xf32, #tpu.memory_space<vmem>>, vector<16x128xf32>,
    %c0_5 = arith.constant 0 : index
    %c0_6 = arith.constant 0 : index
    %6 = vector.load %arg3[%c0_5, %c0_6] : memref<16x128xf32, #tpu.memory_space<vmem>>, vector<16x128xf32>
    %7 = arith.cmpf ogt, %4, %6 : vector<16x128xf32>
    %8 = arith.extui %7 : vector<16x128xi1> to vector<16x128xi32>
    %9 = arith.sitofp %8 : vector<16x128xi32> to vector<16x128xf32>
    %c0_7 = arith.constant 0 : index
    %c0_8 = arith.constant 0 : index
    %10 = vector.load %arg4[%c0_7, %c0_8] : memref<16x128xf32, #tpu.memory_space<vmem>>, vector<16x128xf32>
    tpu.vector_store %arg4[%c0_7, %c0_8], %9 {strides = array<i32>} : memref<16x128xf32, #tpu.memory_space<vmem>>, vector<16x128xf32>,
    %11 = arith.subf %4, %6 : vector<16x128xf32>
    %12 = arith.select %7, %11, %4 : vector<16x128xi1>, vector<16x128xf32>
    %c0_9 = arith.constant 0 : index
    %c0_10 = arith.constant 0 : index
    %13 = vector.load %arg5[%c0_9, %c0_10] : memref<16x128xf32, #tpu.memory_space<vmem>>, vector<16x128xf32>
    tpu.vector_store %arg5[%c0_9, %c0_10], %12 {strides = array<i32>} : memref<16x128xf32, #tpu.memory_space<vmem>>, vector<16x128xf32>,
    %cst_11 = arith.constant 1.500000e+00 : f32
    %cst_12 = arith.constant 0.949999988 : f32
    %14 = vector.broadcast %cst_11 : f32 to vector<16x128xf32>
    %15 = vector.broadcast %cst_12 : f32 to vector<16x128xf32>
    %16 = arith.select %7, %14, %15 : vector<16x128xi1>, vector<16x128xf32>
    %17 = arith.mulf %6, %16 : vector<16x128xf32>
    %c0_13 = arith.constant 0 : index
    %c0_14 = arith.constant 0 : index
    %18 = vector.load %arg7[%c0_13, %c0_14] : memref<16x128xf32, #tpu.memory_space<vmem>>, vector<16x128xf32>
    tpu.vector_store %arg7[%c0_13, %c0_14], %17 {strides = array<i32>} : memref<16x128xf32, #tpu.memory_space<vmem>>, vector<16x128xf32>,
    return
  }
  func.func @transform_0(%arg0: i32) -> (i32, i32) {
    %c0_i32 = arith.constant 0 : i32
    %c0_i32_0 = arith.constant 0 : i32
    return %arg0, %c0_i32 : i32, i32
  }
  func.func @transform_1(%arg0: i32) -> (i32, i32) {
    %c0_i32 = arith.constant 0 : i32
    %c0_i32_0 = arith.constant 0 : i32
    return %arg0, %c0_i32 : i32, i32
  }
  func.func @transform_2(%arg0: i32) -> (i32, i32) {
    %c0_i32 = arith.constant 0 : i32
    %c0_i32_0 = arith.constant 0 : i32
    return %arg0, %c0_i32 : i32, i32
  }
  func.func @transform_3(%arg0: i32) -> (i32, i32) {
    %c0_i32 = arith.constant 0 : i32
    %c0_i32_0 = arith.constant 0 : i32
    return %arg0, %c0_i32 : i32, i32
  }
  func.func @transform_4(%arg0: i32) -> (i32, i32) {
    %c0_i32 = arith.constant 0 : i32
    %c0_i32_0 = arith.constant 0 : i32
    return %arg0, %c0_i32 : i32, i32
  }
  func.func @transform_5(%arg0: i32) -> (i32, i32) {
    %c0_i32 = arith.constant 0 : i32
    %c0_i32_0 = arith.constant 0 : i32
    return %arg0, %c0_i32 : i32, i32
  }
  func.func @transform_6(%arg0: i32) -> (i32, i32) {
    %c0_i32 = arith.constant 0 : i32
    %c0_i32_0 = arith.constant 0 : i32
    return %arg0, %c0_i32 : i32, i32
  }
}

</mosaic_0001>

<bundles_post_ra>
// kernel: _lif_step.1
= control target key start
LH: loop header
LB: loop body
LE: loop exit
PB: predicated region body
PF: predicated region fallthrough
CT: control target
= control target key end

     0   :  { %s211_s0 = inlined_call_operand.vmem [shape: f32[16,128], index: 0, kind: input, shape index: {}]   ;;  %s212_s1 = inlined_call_operand.vmem [shape: f32[16,128], index: 1, kind: input, shape index: {}, may-alias: {1,4}]   ;;  %s213_s2 = inlined_call_operand.vmem [shape: f32[16,128], index: 2, kind: input, shape index: {}, may-alias: {2,6}]   ;;  %s214_s3 = inlined_call_operand.vmem [shape: f32[16,128], index: 3, kind: output, shape index: {0}]   ;;  %s215_s4 = inlined_call_operand.vmem [shape: f32[16,128], index: 4, kind: output, shape index: {1}, may-alias: {1,4}]   ;;  %s216_s5 = inlined_call_operand.hbm [shape: f32[16,128], index: 5, kind: output, shape index: {2}]   ;;  %s217_s6 = inlined_call_operand.vmem [shape: f32[16,128], index: 6, kind: output, shape index: {3}, may-alias: {2,6}]  }
   0x1   :  { %v19_v0 = vld [vmem:[%s212_s1] sm:$0xff]  ;;  %v20_v2 = vld [vmem:[%s212_s1 + $0x8] sm:$0xff] }
   0x2   :  { %v23_v1 = vld [vmem:[%s211_s0] sm:$0xff]  ;;  %v21_v3 = vmul.f32 0.9, %v19_v0  ;;  %v22_v4 = vmul.f32 0.9, %v20_v2  ;;  %v24_v5 = vld [vmem:[%s211_s0 + $0x8] sm:$0xff] }
   0x3   :  { %v29_v6 = vld [vmem:[%s213_s2] sm:$0xff]  ;;  %v30_v7 = vld [vmem:[%s213_s2 + $0x8] sm:$0xff] }
   0x4   :  { %12 = vsyncpa [#allocation3], 0  ;;  %v25_v8 = vadd.f32 %v23_v1, %v21_v3  ;;  %v26_v9 = vadd.f32 %v24_v5, %v22_v4  ;;  %s110_s9 = smov [#allocation2]   ;;  %v111_v12 = vmov 0.0   ;;  %v112_v15 = vmov 0.95  }
   0x5   :  { %s60_s10 = sshll.u32 %s110_s9, 4  ;;  %s168_s10 = int_to_ptr.vmem [resolvable:$true] %s60_s10 }
   0x6   :  { %27 = vst [vmem:[#allocation2] sm:$0xff] %v25_v8  ;;  %28 = vst [vmem:[#allocation2 + $0x8] sm:$0xff] %v26_v9  ;;  %vm31_vm0 = vcmp.gt.f32.partialorder %v25_v8, %v29_v6  ;;  %vm32_vm1 = vcmp.gt.f32.partialorder %v26_v9, %v30_v7  ;;  %v39_v10 = vsub.f32 %v25_v8, %v29_v6  ;;  %s86_s0 = scalar_lea.vmem %s168_s10, 256  ;;  %p91_p1 = scmp.lt.s32.totalorder %s168_s10, %s168_s10 }
   0x7   :  { %v40_v11 = vsub.f32 %v26_v9, %v30_v7  ;;  %v79_v13 = vsel %vm31_vm0, 1.0, %v111_v12  ;;  %v80_v14 = vsel %vm32_vm1, 1.0, %v111_v12  ;;  %v45_v16 = vsel %vm31_vm0, 1.5, %v112_v15  ;;  %p87_p0 = scmp.ne.s32.totalorder %s168_s10, %s86_s0  ;;  %p92_p2 = scmp.lt.s32.totalorder %s86_s0, %s86_s0 }
   0x8   :  { %v46_v17 = vsel %vm32_vm1, 1.5, %v112_v15 }
   0x9   :  { %p93_p3 = por %p92_p2, %p91_p1 }
   0xb   :  { %p94_p4 = pnand %p93_p3, %p87_p0 }
   0xd   :  { %97 = shalt.err (!%p94_p4)
}
   0xe   :  { %s98_s11 = scalar_lea.hbm %s216_s5, 256 }
   0xf   :  { %p99_p5 = scmp.ne.s32.totalorder %s216_s5, %s98_s11  ;;  %p102_p6 = scmp.lt.u32.totalorder %s98_s11, %s216_s5 }
  0x11   :  { %p104_p7 = pnand %p102_p6, %p99_p5 }
  0x13   :  { %107 = shalt.err (!%p104_p7)
}
  0x14   :  { %s113_s16 = smov 128   ;;  %s114_s17 = smov 8   ;;  %37 = vst [vmem:[%s214_s3] sm:$0xff] %v79_v13  ;;  %38 = vst [vmem:[%s214_s3 + $0x8] sm:$0xff] %v80_v14  ;;  %v41_v18 = vsel %vm31_vm0, %v39_v10, %v25_v8  ;;  %v42_v19 = vsel %vm32_vm1, %v40_v11, %v26_v9  ;;  %v47_v20 = vmul.f32 %v45_v16, %v29_v6 }
  0x15   :  { %66 = dma.vmem_to_hbm [thread:$0]  %s168_s10, 256, %s216_s5, [#allocation3], %s113_s16, %s113_s16, %s114_s17   ;;  %v48_v21 = vmul.f32 %v46_v17, %v30_v7 }
  0x16   :  { %43 = vst [vmem:[%s215_s4] sm:$0xff] %v41_v18  ;;  %44 = vst [vmem:[%s215_s4 + $0x8] sm:$0xff] %v42_v19 }
  0x17   :  { %49 = vst [vmem:[%s217_s6] sm:$0xff] %v47_v20  ;;  %50 = vst [vmem:[%s217_s6 + $0x8] sm:$0xff] %v48_v21 }
  0x18   :  { %108 = dma.done.wait [#allocation3], 256  }
  0x19   :  { %109 = vsyncadd [#allocation3], 4294967040 }
  0x1a   :  { %78 = vsyncpa [#allocation3], 1 }

</bundles_post_ra>
